<compile_context>
chip_gen: v7x
topology: tpu7x:2x2x1
jax: 0.10.0
libtpu: 0.0.40
codegen_flags: <defaults>
</compile_context>

<pallas_src>
import numpy as np
import jax
import jax.numpy as jnp
from jax.experimental import pallas as pl
from jax.experimental.pallas import tpu as pltpu


def _round_up(x, m):
    return ((x + m - 1) // m) * m


def _pick_tile_g(g):
    """G (lane) tile: 128-aligned, clamped to [256, 2048], aim for ~8 tiles."""
    g128 = _round_up(max(g, 1), 128)
    target = _round_up(-(-g // 8), 128)          # ~8 tiles -> >=4 per v7x core
    tg = max(256, min(2048, target))
    tg = min(tg, g128)                           # never wider than padded G
    return max(tg, 128)


# --------------------------------------------------------------------------
# Kernel: sigmoid(mask tile) + (C_pad, Q) @ (Q, TG) -> (C_pad, TG) semseg tile.
# 1-D grid over G tiles; contraction is over Q, so every tile is independent
# (fully "parallel", no accumulator, no persistent scratch).
# --------------------------------------------------------------------------
def _mask_semseg_kernel(cls_t_ref, masks_ref, sig_ref, semseg_t_ref):
    # masks may be bf16; cast to f32 for the EUP sigmoid.
    sig = jax.nn.sigmoid(masks_ref[...].astype(jnp.float32))        # (Q, TG)
    sig_ref[...] = sig
    # Canonical MXU orientation; lane-dense (C_pad, TG) output.
    semseg_t_ref[...] = jnp.dot(cls_t_ref[...], sig,
                                preferred_element_type=jnp.float32)


@jax.jit
def svg_inference(logits_b0, masks_b0):
    """Pallas inference on batch-0 decoder outputs.

    Returns:
      semseg : (G, C)   = einsum('qc,qg->gc', softmax(logits)[:, :C], sigmoid(masks))
      probs  : (Q, C+1) = softmax(logits)      (reused by instance_inference)
      sig    : (Q, G)   = sigmoid(masks)       (reused by instance_inference)
    """
    Q, C1 = logits_b0.shape
    Q2, G = masks_b0.shape
    assert Q == Q2
    C = C1 - 1

    # ---- tiny class softmax: plain XLA (reused by instance_inference) -----
    probs = jax.nn.softmax(logits_b0.astype(jnp.float32), axis=-1)   # (Q, C1)

    # Resident class-prob tile in (C_pad, Q) layout, C padded to 8 sublanes
    # with zero rows (full-vreg stores; zero rows are free in the MXU).
    C_pad = _round_up(max(C, 1), 8)
    cls_t = jnp.zeros((C_pad, Q), jnp.float32)
    cls_t = cls_t.at[:C, :].set(jnp.transpose(probs[:, :C]))

    # ---- G tiling: ragged last tile handled by Pallas (no host pad) -------
    tg = _pick_tile_g(G)
    n_tiles = pl.cdiv(G, tg)

    # VMEM limit sized from the actual tile footprint (double-buffered
    # streamed input + both outputs + resident cls_t + slack), capped for
    # v7x's 64 MiB physical VMEM per TensorCore.
    in_bytes = jnp.dtype(masks_b0.dtype).itemsize
    tile_bytes = Q * tg * in_bytes + Q * tg * 4 + C_pad * tg * 4
    vmem_bytes = 2 * tile_bytes + 2 * C_pad * Q * 4 + (2 << 20)
    vmem_bytes = int(min(max(vmem_bytes, 16 << 20), 64 << 20))

    cost = pl.CostEstimate(
        flops=2 * C_pad * Q * G,
        transcendentals=Q * G,
        bytes_accessed=in_bytes * Q * G + 4 * (Q * G + C_pad * G + C_pad * Q),
    )

    sig, semseg_t = pl.pallas_call(
        _mask_semseg_kernel,
        out_shape=(
            jax.ShapeDtypeStruct((Q, G), jnp.float32),       # sigmoid(masks)
            jax.ShapeDtypeStruct((C_pad, G), jnp.float32),   # semseg^T (lane-dense)
        ),
        grid=(n_tiles,),
        in_specs=[
            pl.BlockSpec((C_pad, Q), lambda g: (0, 0)),      # resident class probs
            pl.BlockSpec((Q, tg), lambda g: (0, g)),         # streamed mask tile
        ],
        out_specs=(
            pl.BlockSpec((Q, tg), lambda g: (0, g)),
            pl.BlockSpec((C_pad, tg), lambda g: (0, g)),
        ),
        compiler_params=pltpu.CompilerParams(
            dimension_semantics=("parallel",),               # megacore-shard G on v7x
            vmem_limit_bytes=vmem_bytes,
        ),
        cost_estimate=cost,
    )(cls_t, masks_b0)

    semseg = jnp.transpose(semseg_t[:C, :])                  # (G, C) reference layout
    return semseg, probs, sig


def semantic_inference(pred_logits, pred_masks):
    """Equivalent of SVGNet.semantic_inference (PyTorch uses batch element 0)."""
    semseg, _, _ = svg_inference(pred_logits[0], pred_masks[0])
    return semseg


def instance_inference_np(probs, sig, num_classes,
                          test_object_score=0.1, overlap_threshold=0.8):
    """Host-side, data-dependent part of SVGNet.instance_inference.

    `probs` / `sig` come from the Pallas kernel; the keep-filter and the
    per-instance loop have dynamic shapes and run on the host, matching the
    reference semantics exactly.
    """
    probs = np.asarray(probs)
    sig = np.asarray(sig)
    scores = probs.max(-1)
    labels = probs.argmax(-1)
    keep = (labels != num_classes) & (scores >= test_object_score)
    cur_scores = scores[keep]
    cur_classes = labels[keep]
    cur_masks = sig[keep]
    cur_prob_masks = cur_scores[:, None] * cur_masks

    results = []
    if cur_prob_masks.shape[0] == 0:
        # torch argmax over empty dim raises -> reference returns [] via except
        return results
    cur_mask_ids = cur_prob_masks.argmax(0)
    current_segment_id = 0
    for k in range(cur_classes.shape[0]):
        pred_class = int(cur_classes[k])
        pred_score = float(cur_scores[k])
        mask_area = int((cur_mask_ids == k).sum())
        original_area = int((cur_masks[k] >= 0.5).sum())
        mask = (cur_mask_ids == k) & (cur_masks[k] >= 0.5)
        if mask_area > 0 and original_area > 0 and int(mask.sum()) > 0:
            if mask_area / original_area < overlap_threshold:
                continue
            current_segment_id += 1
            results.append(
                {"masks": mask, "labels": pred_class, "scores": pred_score}
            )
    return results


def svgnet_forward_inference(pred_logits, pred_masks, num_classes):
    """Eval branch of SVGNet._forward operating on decoder outputs."""
    semseg, probs, sig = svg_inference(pred_logits[0], pred_masks[0])
    instances = instance_inference_np(probs, sig, num_classes)
    return {"semantic_scores": semseg, "instances": instances}


def _check(pred_logits, pred_masks):
    semseg, probs, sig = svg_inference(pred_logits[0], pred_masks[0])
    jax.block_until_ready((semseg, probs, sig))
    ref_probs = jax.nn.softmax(pred_logits[0], axis=-1)
    ref_sig = jax.nn.sigmoid(pred_masks[0])
    ref_semseg = jnp.einsum("qc,qg->gc", ref_probs[:, :-1], ref_sig)
    np.testing.assert_allclose(np.asarray(probs), np.asarray(ref_probs),
                               rtol=1e-5, atol=1e-5)
    np.testing.assert_allclose(np.asarray(sig), np.asarray(ref_sig),
                               rtol=1e-5, atol=1e-5)
    np.testing.assert_allclose(np.asarray(semseg), np.asarray(ref_semseg),
                               rtol=1e-5, atol=1e-5)
    return probs, sig


if __name__ == "__main__":
    # Small shapes consistent with the forward pass:
    #   B batches, Q object queries, C semantic classes (+1 background),
    #   G svg primitives ("lines") per drawing.
    B, Q, NUM_CLASSES, G = 2, 8, 4, 16
    C1 = NUM_CLASSES + 1

    key = jax.random.PRNGKey(0)
    k1, k2, k3, k4 = jax.random.split(key, 4)
    # Deterministic stand-ins for decoder outputs (pred_logits, pred_masks).
    pred_logits = jax.random.normal(k1, (B, Q, C1), dtype=jnp.float32)
    pred_masks = jax.random.normal(k2, (B, Q, G), dtype=jnp.float32)

    probs, sig = _check(pred_logits, pred_masks)
    instances = instance_inference_np(probs, sig, NUM_CLASSES)
    _ = len(instances)  # host-side result list, shapes are data-dependent

    # Second check exercising a multi-tile ragged G (no host pad/de-pad path).
    pred_logits2 = jax.random.normal(k3, (B, 16, 6), dtype=jnp.float32)
    pred_masks2 = jax.random.normal(k4, (B, 16, 300), dtype=jnp.float32)
    _check(pred_logits2, pred_masks2)

    print("KERNEL_OK")
</pallas_src>

<mosaic_0001>
module attributes {stable_mosaic.version = 11 : i64} {
  func.func @_mask_semseg_kernel(%arg0: i32, %arg1: memref<8x8xf32, #tpu.memory_space<vmem>>, %arg2: memref<8x128xf32, #tpu.memory_space<vmem>>, %arg3: memref<8x128xf32, #tpu.memory_space<vmem>>, %arg4: memref<8x128xf32, #tpu.memory_space<vmem>>) attributes {dimension_semantics = [#tpu.dimension_semantics<parallel>], iteration_bounds = array<i64: 1>, scalar_prefetch = 0 : i64, scratch_operands = 0 : i64, tpu.core_type = #tpu.core_type<tc>, window_params = [{pipeline_mode = #tpu.pipeline_mode<synchronous>, transform_indices = @transform_0, window_bounds = array<i64: 8, 8>}, {transform_indices = @transform_1, window_bounds = array<i64: 8, 128>}, {transform_indices = @transform_2, window_bounds = array<i64: 8, 128>}, {transform_indices = @transform_3, window_bounds = array<i64: 8, 128>}]} {
    %c0 = arith.constant 0 : index
    %c0_0 = arith.constant 0 : index
    %0 = vector.load %arg2[%c0, %c0_0] : memref<8x128xf32, #tpu.memory_space<vmem>>, vector<8x128xf32>
    %1 = arith.negf %0 : vector<8x128xf32>
    %2 = math.exp %1 : vector<8x128xf32>
    %cst = arith.constant 1.000000e+00 : f32
    %3 = vector.broadcast %cst : f32 to vector<8x128xf32>
    %4 = arith.addf %3, %2 : vector<8x128xf32>
    %5 = arith.divf %3, %4 : vector<8x128xf32>
    %c0_1 = arith.constant 0 : index
    %c0_2 = arith.constant 0 : index
    %6 = vector.load %arg3[%c0_1, %c0_2] : memref<8x128xf32, #tpu.memory_space<vmem>>, vector<8x128xf32>
    tpu.vector_store %arg3[%c0_1, %c0_2], %5 {strides = array<i32>} : memref<8x128xf32, #tpu.memory_space<vmem>>, vector<8x128xf32>,
    %c0_3 = arith.constant 0 : index
    %c0_4 = arith.constant 0 : index
    %7 = vector.load %arg1[%c0_3, %c0_4] : memref<8x8xf32, #tpu.memory_space<vmem>>, vector<8x8xf32>
    %cst_5 = arith.constant dense<0.000000e+00> : vector<8x128xf32>
    %8 = tpu.matmul %7, %5, %cst_5 {dimension_numbers = #tpu.dot_dimension_numbers<[1], [0], [0], [1], [0, 0, 1, 1], [], []>} : vector<8x8xf32>, vector<8x128xf32>, vector<8x128xf32> -> vector<8x128xf32>
    %c0_6 = arith.constant 0 : index
    %c0_7 = arith.constant 0 : index
    %9 = vector.load %arg4[%c0_6, %c0_7] : memref<8x128xf32, #tpu.memory_space<vmem>>, vector<8x128xf32>
    tpu.vector_store %arg4[%c0_6, %c0_7], %8 {strides = array<i32>} : memref<8x128xf32, #tpu.memory_space<vmem>>, vector<8x128xf32>,
    return
  }
  func.func @transform_0(%arg0: i32) -> (i32, i32) {
    %c0_i32 = arith.constant 0 : i32
    %c0_i32_0 = arith.constant 0 : i32
    %c0_i32_1 = arith.constant 0 : i32
    return %c0_i32, %c0_i32_0 : i32, i32
  }
  func.func @transform_1(%arg0: i32) -> (i32, i32) {
    %c0_i32 = arith.constant 0 : i32
    %c0_i32_0 = arith.constant 0 : i32
    return %c0_i32, %arg0 : i32, i32
  }
  func.func @transform_2(%arg0: i32) -> (i32, i32) {
    %c0_i32 = arith.constant 0 : i32
    %c0_i32_0 = arith.constant 0 : i32
    return %c0_i32, %arg0 : i32, i32
  }
  func.func @transform_3(%arg0: i32) -> (i32, i32) {
    %c0_i32 = arith.constant 0 : i32
    %c0_i32_0 = arith.constant 0 : i32
    return %c0_i32, %arg0 : i32, i32
  }
}

</mosaic_0001>

<bundles_post_ra>
// kernel: svg_inference.1
= control target key start
LH: loop header
LB: loop body
LE: loop exit
PB: predicated region body
PF: predicated region fallthrough
CT: control target
= control target key end

     0   :  { %v156_v1 = vmov 0.0   ;;  %vm157_vm0 = vmmov 0   ;;  %s200_s0 = inlined_call_operand.vmem [shape: f32[8,8], index: 0, kind: input, shape index: {}]   ;;  %s201_s1 = inlined_call_operand.vmem [shape: f32[8,16], index: 1, kind: input, shape index: {}]   ;;  %s202_s2 = inlined_call_operand.hbm [shape: f32[8,16], index: 2, kind: output, shape index: {0}]   ;;  %s203_s3 = inlined_call_operand.vmem [shape: f32[8,16], index: 3, kind: output, shape index: {1}]  }
   0x1   :  { %v14_v0 = vld [vmem:[%s201_s1] sm:$0xff]  ;;  %120 = vmatprep.subr.mxu0 %v156_v1  ;;  %122 = vmatprep.mubr.msk.f32.mxu0 %vm157_vm0, %v156_v1 }
   0x2   :  { %v116_v2 = vmul.f32 -1.442695, %v14_v0 }
   0x3   :  { %9 = vsyncpa [#allocation3], 0  ;;  %v22_v5 = vld [vmem:[%s200_s0] sm:$0xff]  ;;  %vm23_vm1 = vcmask 64512   ;;  %s158_s1 = smov [#allocation2]  }
   0x4   :  { %128 = vpow2.f32 %v116_v2  ;;  %s104_s16 = sshll.u32 %s158_s1, 4  ;;  %s105_s16 = int_to_ptr.vmem [resolvable:$true] %s104_s16 }
   0x5   :  { %s132_s17 = scalar_lea.vmem %s105_s16, 128  ;;  %p137_p1 = scmp.lt.s32.totalorder %s105_s16, %s105_s16 }
   0x6   :  { %p133_p0 = scmp.ne.s32.totalorder %s105_s16, %s132_s17  ;;  %p138_p2 = scmp.lt.s32.totalorder %s132_s17, %s132_s17 }
   0x8   :  { %p139_p3 = por %p138_p2, %p137_p1 }
   0xa   :  { %p140_p4 = pnand %p139_p3, %p133_p0 }
   0xe   :  { %v129_v3 = vpop.eup %128 }
   0xf   :  { %v18_v4 = vadd.f32 1.0, %v129_v3 }
  0x11   :  { %130 = vrcp.f32 %v18_v4 }
  0x1b   :  { %v131_v6 = vpop.eup %130 }
  0x1c   :  { %121 = vmatpush3.msra.mxu0 %v131_v6  ;;  %21 = vst [vmem:[#allocation2] sm:$0xff] %v131_v6 }
  0x1d   :  { %123 = vmatmul.mubr.msk.f32.vlgmr.msra.gmra.mrb[0].mxu0 %vm23_vm1, %v22_v5 }
  0x1e   :  { %143 = shalt.err (!%p140_p4)
}
  0x1f   :  { %s144_s20 = scalar_lea.hbm %s202_s2, 128 }
  0x20   :  { %p145_p5 = scmp.ne.s32.totalorder %s202_s2, %s144_s20  ;;  %p148_p6 = scmp.lt.u32.totalorder %s144_s20, %s202_s2 }
  0x22   :  { %p150_p7 = pnand %p148_p6, %p145_p5 }
  0x24   :  { %153 = shalt.err (!%p150_p7)
}
  0x25   :  { %107 = dma.vmem_to_hbm [thread:$0]  %s105_s16, 128, %s202_s2, [#allocation3]  }
  0xf0   :  { %v93_v7 = vpop.f32.mrb[0].mxu0 }
  0xf1   :  { %97 = vst [vmem:[%s203_s3] sm:$0xff] %v93_v7  ;;  %v124_v8 = vpop.f32.mrb[1].mxu0 }
  0xf2   :  { %154 = dma.done.wait [#allocation3], 128  }
  0xf3   :  { %155 = vsyncadd [#allocation3], 4294967168 }
  0xf4   :  { %115 = vsyncpa [#allocation3], 1 }

</bundles_post_ra>
